<compile_context>
chip_gen: v5e
topology: v5e:2x2
jax: 0.10.0
libtpu: 0.0.40
codegen_flags: <defaults>
</compile_context>

<pallas_src>
import functools
import math

import jax
import jax.numpy as jnp
from jax.experimental import pallas as pl
from jax.experimental.pallas import tpu as pltpu


def _cdiv(a, b):
    return -(-a // b)


def _round_up(a, b):
    return _cdiv(a, b) * b


def _tpu_defaults():
    """Per-generation (num_shards, max_tile_bytes, vmem_limit_bytes)."""
    num_shards, max_tile_bytes, vmem_limit = 1, 4 << 20, None
    try:
        kind = jax.devices()[0].device_kind.lower()
    except Exception:
        kind = ""
    if ("v5 lite" in kind) or ("v5e" in kind) or ("v5lite" in kind):
        # v5e: 16 MiB default scoped VMEM -> modest tiles + explicit raise.
        num_shards, max_tile_bytes, vmem_limit = 1, 6 << 20, 32 << 20
    elif ("v4" in kind) or ("v5p" in kind) or ("v5" in kind):
        # v4 / v5p megacore: 2 TCs behind one device, 128 MiB VMEM.
        num_shards, max_tile_bytes, vmem_limit = 2, 12 << 20, 64 << 20
    elif "v6" in kind:
        # v6e: single TC, 128 MiB physical VMEM -> big tiles, raised scope.
        num_shards, max_tile_bytes, vmem_limit = 1, 12 << 20, 64 << 20
    elif ("v7" in kind) or ("7x" in kind):
        # v7x: 2 TCs, only 64 MiB VMEM per TC -> shard rows, moderate tiles.
        num_shards, max_tile_bytes, vmem_limit = 2, 10 << 20, 48 << 20
    return num_shards, max_tile_bytes, vmem_limit


def _label_smoothing_kernel(tgt_ref, x_ref, loss_ref, *scratch, size,
                            padding_idx, smoothing, block_rows, block_v,
                            steps, v_chunks, total_blocks, staged_target,
                            needs_vmask):
    """Grid point (c, i, k): rows of block (c*steps+i), vocab chunk k.

    tgt_ref : staged -> (n_t, 1) int32 (whole padded target, fetched once)
              else   -> (block_rows, 1) int32 per-step block
    x_ref   : (block_rows, block_v) log-probs
    loss_ref: (1, 1) float32 per-shard running sum (SMEM, resident over i,k)
    scratch : [(block_rows, 1) f32 weighted-sum accumulator] iff v_chunks > 1
    """
    c = pl.program_id(0)
    i = pl.program_id(1)
    k = pl.program_id(2)
    blk = c * steps + i
    blk_clamped = jnp.minimum(blk, total_blocks - 1)

    # Per-shard accumulator lives directly in the resident SMEM output block.
    @pl.when(jnp.logical_and(i == 0, k == 0))
    def _():
        loss_ref[0, 0] = jnp.float32(0.0)

    x = x_ref[...].astype(jnp.float32)                 # (block_rows, block_v)

    if staged_target:
        row0 = pl.multiple_of(blk_clamped * block_rows, 8)
        tgt = tgt_ref[pl.ds(row0, block_rows), :]      # (block_rows, 1) i32
    else:
        tgt = tgt_ref[...]                             # (block_rows, 1) i32

    confidence = 1.0 - smoothing
    smooth_val = (smoothing / (size - 2)) if size > 2 else 0.0
    # sum_j td_j * log(td_j) for a non-padding row -- compile-time constant.
    c_term = 0.0
    if confidence > 0.0:
        c_term += confidence * math.log(confidence)
    if smooth_val > 0.0:
        c_term += (size - 2) * smooth_val * math.log(smooth_val)

    # (1, block_v) column ids, broadcast against (block_rows, 1) targets.
    col = jax.lax.broadcasted_iota(jnp.int32, (1, block_v), 1)
    if v_chunks > 1:
        col = col + k * block_v
    base_w = jnp.where(col == jnp.int32(padding_idx),
                       jnp.float32(0.0), jnp.float32(smooth_val))
    w = jnp.where(col == tgt, jnp.float32(confidence), base_w)
    if needs_vmask:
        # partial last vocab chunk: zero out-of-range (possibly stale) lanes
        x = jnp.where(col < jnp.int32(size), x, jnp.float32(0.0))

    wsum_step = jnp.sum(w * x, axis=-1, keepdims=True)  # (block_rows, 1)

    if v_chunks == 1:
        wsum = wsum_step
    else:
        wsum_ref = scratch[0]

        @pl.when(k == 0)
        def _():
            wsum_ref[...] = jnp.zeros_like(wsum_ref)

        wsum_ref[...] += wsum_step
        wsum = wsum_ref[...]

    def _finalize():
        loss_rows = jnp.float32(c_term) - wsum           # (block_rows, 1)
        # rows whose target == padding_idx contribute 0 (also covers rows
        # beyond N, whose padded target is padding_idx); duplicate/clamped
        # row blocks (blk >= total_blocks) contribute 0 as well.
        valid = jnp.logical_and(tgt != jnp.int32(padding_idx),
                                blk < total_blocks)
        loss_rows = jnp.where(valid, loss_rows, jnp.float32(0.0))
        loss_ref[0, 0] += jnp.sum(loss_rows)

    if v_chunks == 1:
        _finalize()
    else:
        pl.when(k == v_chunks - 1)(_finalize)


def label_smoothing_loss(x, target, *, size, padding_idx, smoothing,
                         num_shards=None, max_tile_bytes=None,
                         vmem_limit_bytes=None):
    """x: (N, V) log-probs, target: (N,) int. Returns scalar f32 KL-div sum."""
    N, V = x.shape
    assert V == size
    if smoothing > 0.0:
        # torch module divides by (size - 2); same contract here.
        assert size > 2, "smoothing > 0 requires size > 2"
    target = target.astype(jnp.int32)

    d_shards, d_tile, d_vmem = _tpu_defaults()
    num_shards = d_shards if num_shards is None else num_shards
    max_tile_bytes = d_tile if max_tile_bytes is None else max_tile_bytes
    vmem_limit_bytes = d_vmem if vmem_limit_bytes is None else vmem_limit_bytes

    itemsize = jnp.dtype(x.dtype).itemsize
    row_bytes = _round_up(V, 128) * itemsize        # lane-padded bytes per row
    cap_rows = (max_tile_bytes // row_bytes) // 8 * 8

    if cap_rows >= 8:
        # Common case: whole vocab per block; rows limited only by the budget.
        block_v, v_chunks = V, 1
        block_rows = max(8, min(cap_rows, _round_up(N, 8)))
    else:
        # Huge vocab: tile the vocab axis, 8 rows per block.
        block_rows = 8
        block_v = max(128, (max_tile_bytes // (8 * itemsize)) // 128 * 128)
        block_v = min(block_v, _round_up(V, 128))
        v_chunks = _cdiv(V, block_v)
    needs_vmask = (block_v * v_chunks) != V

    total_blocks = _cdiv(N, block_rows)
    num_shards = max(1, min(num_shards, total_blocks))
    steps = _cdiv(total_blocks, num_shards)

    # Only the tiny target is padded; x is never copied.  Out-of-range row
    # blocks are clamped in the index_map and masked in-kernel.
    n_t = total_blocks * block_rows
    if n_t != N:
        target = jnp.pad(target, (0, n_t - N), constant_values=padding_idx)
    tgt2d = target.reshape(n_t, 1)

    # Stage the whole target in VMEM when its lane-padded, double-buffered
    # footprint is small; otherwise stream one small block per step.
    staged_target = (2 * n_t * 128 * 4) <= (4 << 20)
    if staged_target:
        tgt_spec = pl.BlockSpec((n_t, 1), lambda c, i, k: (0, 0))
    else:
        tgt_spec = pl.BlockSpec(
            (block_rows, 1),
            lambda c, i, k: (jnp.minimum(c * steps + i, total_blocks - 1), 0))

    x_spec = pl.BlockSpec(
        (block_rows, block_v),
        lambda c, i, k: (jnp.minimum(c * steps + i, total_blocks - 1), k))

    scratch_shapes = []
    if v_chunks > 1:
        scratch_shapes.append(pltpu.VMEM((block_rows, 1), jnp.float32))

    kernel = functools.partial(
        _label_smoothing_kernel, size=size, padding_idx=padding_idx,
        smoothing=smoothing, block_rows=block_rows, block_v=block_v,
        steps=steps, v_chunks=v_chunks, total_blocks=total_blocks,
        staged_target=staged_target, needs_vmask=needs_vmask)

    cp = dict(dimension_semantics=("parallel", "arbitrary", "arbitrary"))
    if vmem_limit_bytes is not None:
        cp["vmem_limit_bytes"] = int(vmem_limit_bytes)

    partials = pl.pallas_call(
        kernel,
        out_shape=jax.ShapeDtypeStruct((num_shards, 1), jnp.float32),
        grid_spec=pltpu.PrefetchScalarGridSpec(
            num_scalar_prefetch=0,
            grid=(num_shards, steps, v_chunks),
            in_specs=[tgt_spec, x_spec],
            out_specs=pl.BlockSpec((1, 1), lambda c, i, k: (c, 0),
                                   memory_space=pltpu.SMEM),
            scratch_shapes=scratch_shapes,
        ),
        compiler_params=pltpu.CompilerParams(**cp),
    )(tgt2d, x)
    return jnp.sum(partials)


def _reference(x, target, *, size, padding_idx, smoothing):
    """Pure-JAX reference replicating the torch forward."""
    N, V = x.shape
    x = x.astype(jnp.float32)
    confidence = 1.0 - smoothing
    td = jnp.full((N, V), smoothing / (size - 2), jnp.float32)
    td = td.at[jnp.arange(N), target].set(confidence)
    td = td.at[:, padding_idx].set(0.0)
    td = jnp.where((target == padding_idx)[:, None], 0.0, td)
    kl = jnp.where(td > 0, td * (jnp.log(td) - x), 0.0)
    return jnp.sum(kl)


if __name__ == "__main__":
    key = jax.random.PRNGKey(0)
    k1, k2, k3, k4, k5, k6 = jax.random.split(key, 6)

    # --- primary case: mirrors the torch module at small shapes ------------
    SIZE, PADDING_IDX, SMOOTHING = 32, 0, 0.1
    N = 8
    x = jax.nn.log_softmax(
        jax.random.normal(k1, (N, SIZE), dtype=jnp.float32), axis=-1)
    target = jax.random.randint(k2, (N,), 0, SIZE, dtype=jnp.int32)
    target = target.at[3].set(PADDING_IDX)      # exercise padding-row mask

    loss = label_smoothing_loss(x, target, size=SIZE,
                                padding_idx=PADDING_IDX, smoothing=SMOOTHING)
    loss = jax.block_until_ready(loss)
    ref = _reference(x, target, size=SIZE, padding_idx=PADDING_IDX,
                     smoothing=SMOOTHING)
    assert jnp.allclose(loss, ref, rtol=1e-4, atol=1e-4), (loss, ref)

    # --- non-aligned N, forced 2 shards, multiple row steps ----------------
    N2, V2 = 300, 160
    x2 = jax.nn.log_softmax(
        jax.random.normal(k3, (N2, V2), dtype=jnp.float32), axis=-1)
    t2 = jax.random.randint(k4, (N2,), 0, V2, dtype=jnp.int32)
    t2 = t2.at[17].set(PADDING_IDX)
    loss2 = label_smoothing_loss(x2, t2, size=V2, padding_idx=PADDING_IDX,
                                 smoothing=SMOOTHING, num_shards=2,
                                 max_tile_bytes=64 * 1024,
                                 vmem_limit_bytes=32 << 20)
    loss2 = jax.block_until_ready(loss2)
    ref2 = _reference(x2, t2, size=V2, padding_idx=PADDING_IDX,
                      smoothing=SMOOTHING)
    assert jnp.allclose(loss2, ref2, rtol=1e-4, atol=1e-4), (loss2, ref2)

    # --- vocab-chunked path (tiny budget forces v_chunks > 1) --------------
    N3, V3 = 40, 640
    x3 = jax.nn.log_softmax(
        jax.random.normal(k5, (N3, V3), dtype=jnp.float32), axis=-1)
    t3 = jax.random.randint(k6, (N3,), 0, V3, dtype=jnp.int32)
    t3 = t3.at[5].set(PADDING_IDX)
    loss3 = label_smoothing_loss(x3, t3, size=V3, padding_idx=PADDING_IDX,
                                 smoothing=SMOOTHING, num_shards=1,
                                 max_tile_bytes=16 * 1024,
                                 vmem_limit_bytes=32 << 20)
    loss3 = jax.block_until_ready(loss3)
    ref3 = _reference(x3, t3, size=V3, padding_idx=PADDING_IDX,
                      smoothing=SMOOTHING)
    assert jnp.allclose(loss3, ref3, rtol=1e-4, atol=1e-4), (loss3, ref3)

    # TODO(synk): the torch module also stashes `self.true_dist` as a side
    # effect; not reproduced (only the returned loss is computed).
    print("KERNEL_OK")
</pallas_src>

<mosaic_0001>
module attributes {stable_mosaic.version = 11 : i64} {
  func.func @_label_smoothing_kernel(%arg0: i32, %arg1: i32, %arg2: i32, %arg3: memref<8x1xi32, #tpu.memory_space<vmem>>, %arg4: memref<8x32xf32, #tpu.memory_space<vmem>>, %arg5: memref<1x1xf32, #tpu.memory_space<smem>>) attributes {dimension_semantics = [#tpu.dimension_semantics<parallel>, #tpu.dimension_semantics<arbitrary>, #tpu.dimension_semantics<arbitrary>], iteration_bounds = array<i64: 1, 1, 1>, scalar_prefetch = 0 : i64, scratch_operands = 0 : i64, tpu.core_type = #tpu.core_type<tc>, window_params = [{pipeline_mode = #tpu.pipeline_mode<synchronous>, transform_indices = @transform_0, window_bounds = array<i64: 8, 1>}, {transform_indices = @transform_1, window_bounds = array<i64: 8, 32>}, {transform_indices = @transform_2, window_bounds = array<i64: 1, 1>}]} {
    %c1_i32 = arith.constant 1 : i32
    %0 = arith.muli %arg0, %c1_i32 : i32
    %1 = arith.addi %0, %arg1 : i32
    %c0_i32 = arith.constant 0 : i32
    %2 = arith.minsi %1, %c0_i32 : i32
    %c0_i32_0 = arith.constant 0 : i32
    %3 = arith.cmpi eq, %arg1, %c0_i32_0 : i32
    %c0_i32_1 = arith.constant 0 : i32
    %4 = arith.cmpi eq, %arg2, %c0_i32_1 : i32
    %5 = arith.andi %3, %4 : i1
    %6 = arith.extui %5 : i1 to i32
    %c0_i32_2 = arith.constant 0 : i32
    %7 = arith.cmpi ne, %6, %c0_i32_2 : i32
    scf.if %7 {
      %cst_18 = arith.constant 0.000000e+00 : f32
      %c0_19 = arith.constant 0 : index
      %c0_20 = arith.constant 0 : index
      %45 = memref.load %arg5[%c0_19, %c0_20] : memref<1x1xf32, #tpu.memory_space<smem>>
      memref.store %cst_18, %arg5[%c0_19, %c0_20] : memref<1x1xf32, #tpu.memory_space<smem>>
    } else {
    }
    %c0 = arith.constant 0 : index
    %c0_3 = arith.constant 0 : index
    %8 = vector.load %arg4[%c0, %c0_3] : memref<8x32xf32, #tpu.memory_space<vmem>>, vector<8x32xf32>
    %c8_i32 = arith.constant 8 : i32
    %9 = arith.muli %2, %c8_i32 : i32
    %10 = tpu.assume_multiple %9, 8 : i32
    %11 = arith.index_cast %10 : i32 to index
    %c0_4 = arith.constant 0 : index
    %12 = vector.load %arg3[%11, %c0_4] : memref<8x1xi32, #tpu.memory_space<vmem>>, vector<8x1xi32>
    %13 = tpu.iota {dimensions = array<i32: 1>} : vector<1x32xi32>
    %c0_i32_5 = arith.constant 0 : i32
    %14 = vector.broadcast %c0_i32_5 : i32 to vector<1x32xi32>
    %15 = arith.cmpi eq, %13, %14 : vector<1x32xi32>
    %cst = arith.constant 0.000000e+00 : f32
    %cst_6 = arith.constant 0.00333333341 : f32
    %16 = vector.broadcast %cst : f32 to vector<1x32xf32>
    %17 = vector.broadcast %cst_6 : f32 to vector<1x32xf32>
    %18 = arith.select %15, %16, %17 : vector<1x32xi1>, vector<1x32xf32>
    %19 = vector.broadcast %13 : vector<1x32xi32> to vector<8x32xi32>
    %20 = vector.broadcast %12 : vector<8x1xi32> to vector<8x32xi32>
    %21 = arith.cmpi eq, %19, %20 : vector<8x32xi32>
    %cst_7 = arith.constant 0.899999976 : f32
    %22 = vector.broadcast %cst_7 : f32 to vector<8x32xf32>
    %23 = vector.shape_cast %18 : vector<1x32xf32> to vector<1x32xf32>
    %24 = vector.broadcast %23 : vector<1x32xf32> to vector<8x32xf32>
    %25 = arith.select %21, %22, %24 : vector<8x32xi1>, vector<8x32xf32>
    %26 = arith.mulf %25, %8 : vector<8x32xf32>
    %cst_8 = arith.constant dense<0.000000e+00> : vector<8xf32>
    %27 = vector.multi_reduction <add>, %26, %cst_8 [1] : vector<8x32xf32> to vector<8xf32>
    %28 = vector.shape_cast %27 : vector<8xf32> to vector<8x1xf32>
    %cst_9 = arith.constant -0.665202737 : f32
    %29 = vector.broadcast %cst_9 : f32 to vector<8x1xf32>
    %30 = arith.subf %29, %28 : vector<8x1xf32>
    %c0_i32_10 = arith.constant 0 : i32
    %31 = vector.broadcast %c0_i32_10 : i32 to vector<8x1xi32>
    %32 = arith.cmpi ne, %12, %31 : vector<8x1xi32>
    %c1_i32_11 = arith.constant 1 : i32
    %33 = arith.cmpi slt, %1, %c1_i32_11 : i32
    %34 = vector.broadcast %33 : i1 to vector<8x1xi1>
    %35 = arith.andi %32, %34 : vector<8x1xi1>
    %cst_12 = arith.constant 0.000000e+00 : f32
    %36 = vector.broadcast %cst_12 : f32 to vector<8x1xf32>
    %37 = arith.select %35, %30, %36 : vector<8x1xi1>, vector<8x1xf32>
    %c0_13 = arith.constant 0 : index
    %c0_14 = arith.constant 0 : index
    %38 = memref.load %arg5[%c0_13, %c0_14] : memref<1x1xf32, #tpu.memory_space<smem>>
    %39 = vector.shape_cast %37 : vector<8x1xf32> to vector<1x8x1xf32>
    %cst_15 = arith.constant dense<0.000000e+00> : vector<1xf32>
    %40 = vector.multi_reduction <add>, %39, %cst_15 [1, 2] : vector<1x8x1xf32> to vector<1xf32>
    %41 = vector.shape_cast %40 : vector<1xf32> to vector<1x1x1xf32>
    %42 = vector.extract %41[0, 0, 0] : f32 from vector<1x1x1xf32>
    %43 = arith.addf %38, %42 : f32
    %c0_16 = arith.constant 0 : index
    %c0_17 = arith.constant 0 : index
    %44 = memref.load %arg5[%c0_16, %c0_17] : memref<1x1xf32, #tpu.memory_space<smem>>
    memref.store %43, %arg5[%c0_16, %c0_17] : memref<1x1xf32, #tpu.memory_space<smem>>
    return
  }
  func.func @transform_0(%arg0: i32, %arg1: i32, %arg2: i32) -> (i32, i32) {
    %c0_i32 = arith.constant 0 : i32
    %c0_i32_0 = arith.constant 0 : i32
    %c0_i32_1 = arith.constant 0 : i32
    return %c0_i32, %c0_i32_0 : i32, i32
  }
  func.func @transform_1(%arg0: i32, %arg1: i32, %arg2: i32) -> (i32, i32) {
    %c1_i32 = arith.constant 1 : i32
    %0 = arith.muli %arg0, %c1_i32 : i32
    %1 = arith.addi %0, %arg1 : i32
    %c0_i32 = arith.constant 0 : i32
    %2 = arith.minsi %1, %c0_i32 : i32
    %c0_i32_0 = arith.constant 0 : i32
    return %2, %arg2 : i32, i32
  }
  func.func @transform_2(%arg0: i32, %arg1: i32, %arg2: i32) -> (i32, i32) {
    %c0_i32 = arith.constant 0 : i32
    %c0_i32_0 = arith.constant 0 : i32
    return %arg0, %c0_i32 : i32, i32
  }
}

</mosaic_0001>

<bundles_post_ra>
// kernel: tpu_custom_call.1
= control target key start
LH: loop header
LB: loop body
LE: loop exit
PB: predicated region body
PF: predicated region fallthrough
CT: control target
= control target key end

     0   :  { %s162_s0 = inlined_call_operand.vmem [shape: s32[8,1], index: 0, kind: input, shape index: {}]   ;;  %s163_s1 = inlined_call_operand.vmem [shape: f32[8,32], index: 1, kind: input, shape index: {}]   ;;  %s164_s2 = inlined_call_operand.hbm [shape: f32[1,1], index: 2, kind: output, shape index: {}]  }
   0x1   :  { %v53_v0 = vld [vmem:[%s162_s0] sm:$0xff] }
   0x2   :  { %7 = vsyncpa [#allocation3], 0  ;;  %v135_v1 = vmov 0   ;;  %v54_v2 = vlaneseq  ;;  %v136_v4 = vmov 0.0033333334   ;;  %v50_v7 = vld [vmem:[%s163_s1] sm:$0xff] }
   0x3   :  { %120 = vset.pattern.permute.xlu0 %v135_v1  ;;  %vm64_vm2 = vcmask 261120   ;;  %vm69_vm3 = vcmp.ne.s32.totalorder %v53_v0, 0  ;;  %vm77_vm4 = vcmask 7168   ;;  %s96_s13 = sshll.u32 %s164_s2, 4  ;;  %s137_s15 = smov [#allocation2]   ;;  %s97_s13 = int_to_ptr.hbm [resolvable:$true] %s96_s13 }
   0x4   :  { %59 = vperm.xlu0 %120, %v53_v0   ;;  %v55_v3 = vand.u32 127, %v54_v2 }
   0x6   :  { %vm56_vm0 = vcmp.eq.s32.totalorder %v55_v3, 0 }
   0x7   :  { %v57_v5 = vsel %vm56_vm0, 0.0, %v136_v4 }
  0x76   :  { %v60_v6 = vpop.permute.xlu0 %59 }
  0x77   :  { %vm61_vm1 = vcmp.eq.s32.totalorder %v55_v3, %v60_v6 }
  0x78   :  { %v62_v8 = vsel %vm61_vm1, 0.9, %v57_v5 }
  0x79   :  { %v63_v9 = vmul.f32 %v62_v8, %v50_v7 }
  0x7b   :  { %v65_v10 = vsel %vm64_vm2, %v63_v9, 0.0 }
  0x7c   :  { %66 = vadd.xlane.f32.xlu0 %v65_v10 }
  0xef   :  { %v67_v11 = vpop.xlane.xlu0 %66 }
  0xf0   :  { %v68_v12 = vsub.f32 -0.66520274, %v67_v11 }
  0xf2   :  { %v75_v13 = vsel %vm69_vm3, %v68_v12, 0.0 }
  0xf3   :  { %v78_v14 = vsel %vm77_vm4, %v75_v13, 0.0 }
  0xf4   :  { %79 = vadd.xlane.f32.xlu1 %v78_v14 }
 0x167   :  { %v80_v15 = vpop.xlane.xlu1 %79 }
 0x168   :  { %v81_v16 = vrot.slane %v80_v15, 4 }
 0x16a   :  { %v82_v17 = vadd.f32 %v81_v16, %v80_v15 }
 0x16c   :  { %v83_v18 = vrot.slane %v82_v17, 2 }
 0x16e   :  { %v84_v19 = vadd.f32 %v83_v18, %v82_v17 }
 0x170   :  { %v85_v20 = vrot.slane %v84_v19, 1 }
 0x172   :  { %v86_v21 = vadd.f32 %v85_v20, %v84_v19 }
 0x174   :  { %114 = vpush %v86_v21 }
 0x1a5   :  { %s115_s14 = spop %114 }
 0x1a6   :  { %90 = sst [smem:[#allocation2]] %s115_s14 }
 0x1a7   :  { %99 = dma.smem_to_hbm %s137_s15, 16, %s97_s13, [#allocation3]  }
 0x1a8   :  { %133 = dma.done.wait [#allocation3], 16  }
 0x1a9   :  { %134 = vsyncadd [#allocation3], 4294967280 }
 0x1aa   :  { %104 = sfence }
 0x1ab   :  { %105 = vsyncpa [#allocation3], 1 }

</bundles_post_ra>
